<compile_context>
chip_gen: v7x
topology: tpu7x:2x2x1
jax: 0.10.0
libtpu: 0.0.40
codegen_flags: <defaults>
</compile_context>

<pallas_src>
import functools

import jax
import jax.numpy as jnp
from jax.experimental import pallas as pl
from jax.experimental.pallas import tpu as pltpu


def _abs_pow(v, beta):
    """|v| ** beta, specialising small integer beta to plain multiplies (no EUP pow)."""
    if beta == 2.0:
        return v * v
    if beta == 4.0:
        s = v * v
        return s * s
    a = jnp.abs(v)
    if beta == 1.0:
        return a
    if beta == 3.0:
        return a * a * a
    return jnp.power(a, beta)


def _qfl_kernel(logits_ref, labels_ref, score_ref, weight_ref, out_ref, *, beta, num_classes, k):
    C = num_classes
    x = logits_ref[...].astype(jnp.float32)      # (TR, k*C)  lane-dense when k > 1
    lab = labels_ref[...]                        # (TR, k)    int32
    sc = score_ref[...].astype(jnp.float32)      # (TR, k)
    w = weight_ref[...]                          # (1, k*C)   f32, class weights tiled k times

    # --- sigmoid & softplus share one exp (EUP work: exp, log1p, one divide) ---
    e = jnp.exp(-jnp.abs(x))
    inv = 1.0 / (1.0 + e)
    p = jnp.where(x >= 0.0, inv, e * inv)        # sigmoid(x), stable for both signs
    sp = jnp.maximum(x, 0.0) + jnp.log1p(e)      # softplus(x) == BCEwithLogits(x, 0)

    neg = sp * _abs_pow(p, beta)                 # background term for every (sample, class)

    # --- expand per-sample label / quality score across the C lanes of its group ---
    col = jax.lax.broadcasted_iota(jnp.int32, x.shape, 1)
    if k == 1:
        cls = col
        lab_e = lab                              # (TR, 1) broadcasts over the C lanes
        sc_e = sc
    else:
        shift = C.bit_length() - 1               # C is a power of two whenever k > 1
        grp = col >> shift                       # lane -> sample group within the packed row
        cls = col & (C - 1)                      # lane -> class index within its group
        lab_e = jnp.zeros(x.shape, jnp.int32)
        sc_e = jnp.zeros(x.shape, jnp.float32)
        for g in range(k):                       # k is small & static: unrolled VPU selects
            m = grp == g
            lab_e = jnp.where(m, lab[:, g:g + 1], lab_e)
            sc_e = jnp.where(m, sc[:, g:g + 1], sc_e)

    is_pos = (lab_e >= 0) & (lab_e < C)
    sel = is_pos & (cls == lab_e)

    # positive term: BCEwithLogits(x, score) * |score - p|**beta
    pos = (sp - sc_e * x) * _abs_pow(sc_e - p, beta)

    wl = jnp.where(sel, pos, neg) * w            # weighted per-element loss (TR, k*C)

    # --- per-sample weighted class sum -> (TR, k) ---
    if k == 1:
        out_ref[...] = jnp.sum(wl, axis=1, keepdims=True)
    else:
        ocol = jax.lax.broadcasted_iota(jnp.int32, out_ref.shape, 1)
        acc = jnp.zeros(out_ref.shape, jnp.float32)
        for g in range(k):
            s_g = jnp.sum(wl[:, g * C:(g + 1) * C], axis=1, keepdims=True)
            acc = jnp.where(ocol == g, s_g, acc)
        out_ref[...] = acc


def _round_up(a, b):
    return ((a + b - 1) // b) * b


def quality_focal_loss_pallas(logits, labels, score, weight=None, beta=2.0, max_tile_rows=4096):
    N, C = logits.shape

    # Lane packing factor: fold k consecutive samples into one 128-lane row when possible.
    k = (128 // C) if (C <= 128 and 128 % C == 0) else 1

    rows = pl.cdiv(N, k)
    tile_rows = min(max_tile_rows, _round_up(rows, 8))
    if rows > 8 and pl.cdiv(rows, tile_rows) < 2:
        # keep >= 2 grid steps so the "parallel" axis can shard across TensorCores (v7x).
        tile_rows = max(8, _round_up(pl.cdiv(rows, 2), 8))
    grid = pl.cdiv(rows, tile_rows)
    rows_pad = grid * tile_rows
    n_pad = rows_pad * k

    labels_i = labels.astype(jnp.int32)
    score_f = score
    if n_pad != N:  # tail handling: pad rows, slice the output back afterwards
        logits = jnp.pad(logits, ((0, n_pad - N), (0, 0)))
        labels_i = jnp.pad(labels_i, (0, n_pad - N), constant_values=C)   # background
        score_f = jnp.pad(score_f, (0, n_pad - N))

    # Contiguous reshapes (free): (N, C) -> (rows, k*C), (N,) -> (rows, k).
    logits_p = logits.reshape(rows_pad, k * C)   # native dtype; cast to f32 inside the kernel
    labels_p = labels_i.reshape(rows_pad, k)
    score_p = score_f.reshape(rows_pad, k)

    if weight is None:
        w_tiled = jnp.ones((1, k * C), jnp.float32)
    else:
        w_tiled = jnp.tile(jnp.asarray(weight, jnp.float32).reshape(1, C), (1, k))

    kernel = functools.partial(_qfl_kernel, beta=float(beta), num_classes=C, k=k)

    out = pl.pallas_call(
        kernel,
        out_shape=jax.ShapeDtypeStruct((rows_pad, k), jnp.float32),
        grid_spec=pltpu.PrefetchScalarGridSpec(
            num_scalar_prefetch=0,
            grid=(grid,),
            in_specs=[
                pl.BlockSpec((tile_rows, k * C), lambda i: (i, 0)),   # packed logits tile
                pl.BlockSpec((tile_rows, k), lambda i: (i, 0)),       # packed labels tile
                pl.BlockSpec((tile_rows, k), lambda i: (i, 0)),       # packed score tile
                pl.BlockSpec((1, k * C), lambda i: (0, 0)),           # tiled class weights
            ],
            out_specs=pl.BlockSpec((tile_rows, k), lambda i: (i, 0)),
        ),
        compiler_params=pltpu.CompilerParams(dimension_semantics=("parallel",)),
    )(logits_p, labels_p, score_p, w_tiled)

    return out.reshape(rows_pad * k)[:N]


class QualityFocalLoss:
    """JAX/Pallas port of the PyTorch QualityFocalLoss module (forward only)."""

    def __init__(self, use_sigmoid=True, beta=2.0, reduction="mean", weight=None):
        assert reduction in ("mean", "sum", "none")
        assert use_sigmoid is True
        self.use_sigmoid = use_sigmoid
        self.beta = beta
        self.reduction = reduction  # stored but (as in the reference forward) not applied
        self.weight = weight

    def __call__(self, logits, labels, score):
        return quality_focal_loss_pallas(logits, labels, score, self.weight, self.beta)


def _quality_focal_loss_ref(logits, labels, score, weight=None, beta=2.0):
    """Pure-JAX reference matching the PyTorch semantics."""
    x = logits.astype(jnp.float32)
    p = jax.nn.sigmoid(x)
    sp = jnp.maximum(x, 0.0) + jnp.log1p(jnp.exp(-jnp.abs(x)))
    loss = sp * jnp.power(p, beta)
    N, C = x.shape
    col = jnp.arange(C, dtype=jnp.int32)[None, :]
    lab = labels.astype(jnp.int32)[:, None]
    sel = (lab >= 0) & (lab < C) & (col == lab)
    sc = score.astype(jnp.float32)[:, None]
    pos_loss = (sp - sc * x) * jnp.power(jnp.abs(sc - p), beta)
    loss = jnp.where(sel, pos_loss, loss)
    if weight is not None:
        loss = loss * jnp.asarray(weight, jnp.float32)[None, :]
    return loss.sum(axis=1)


if __name__ == "__main__":
    key = jax.random.PRNGKey(0)
    k1, k2, k3 = jax.random.split(key, 3)

    # Case 1: C = 16 (lane-packed path, k = 8), with per-class weights.
    N, C = 256, 16
    logits = jax.random.normal(k1, (N, C), dtype=jnp.float32) * 2.0
    labels = jax.random.randint(k2, (N,), 0, C + 1, dtype=jnp.int32)   # label == C -> background
    score = jax.random.uniform(k3, (N,), dtype=jnp.float32)
    class_weight = jnp.linspace(0.5, 1.5, C, dtype=jnp.float32)

    loss_fn = QualityFocalLoss(use_sigmoid=True, beta=2.0, reduction="mean", weight=class_weight)
    out = jax.block_until_ready(loss_fn(logits, labels, score))
    ref = _quality_focal_loss_ref(logits, labels, score, class_weight, beta=2.0)
    assert out.shape == (N,)
    assert jnp.allclose(out, ref, rtol=1e-4, atol=1e-4), "case1 mismatch vs reference"

    # Case 2: ragged N and C that does not divide 128 (k = 1 fallback path), no weight.
    N2, C2 = 131, 20
    k4, k5, k6 = jax.random.split(jax.random.PRNGKey(1), 3)
    logits2 = jax.random.normal(k4, (N2, C2), dtype=jnp.float32)
    labels2 = jax.random.randint(k5, (N2,), 0, C2 + 1, dtype=jnp.int32)
    score2 = jax.random.uniform(k6, (N2,), dtype=jnp.float32)
    out2 = jax.block_until_ready(quality_focal_loss_pallas(logits2, labels2, score2, beta=2.0))
    ref2 = _quality_focal_loss_ref(logits2, labels2, score2, None, beta=2.0)
    assert out2.shape == (N2,)
    assert jnp.allclose(out2, ref2, rtol=1e-4, atol=1e-4), "case2 mismatch vs reference"

    print("KERNEL_OK")
</pallas_src>

<mosaic_0001>
module attributes {stable_mosaic.version = 11 : i64} {
  func.func @_qfl_kernel(%arg0: i32, %arg1: memref<16x128xf32, #tpu.memory_space<vmem>>, %arg2: memref<16x8xi32, #tpu.memory_space<vmem>>, %arg3: memref<16x8xf32, #tpu.memory_space<vmem>>, %arg4: memref<1x128xf32, #tpu.memory_space<vmem>>, %arg5: memref<16x8xf32, #tpu.memory_space<vmem>>) attributes {dimension_semantics = [#tpu.dimension_semantics<parallel>], iteration_bounds = array<i64: 2>, scalar_prefetch = 0 : i64, scratch_operands = 0 : i64, tpu.core_type = #tpu.core_type<tc>, window_params = [{transform_indices = @transform_0, window_bounds = array<i64: 16, 128>}, {transform_indices = @transform_1, window_bounds = array<i64: 16, 8>}, {transform_indices = @transform_2, window_bounds = array<i64: 16, 8>}, {pipeline_mode = #tpu.pipeline_mode<synchronous>, transform_indices = @transform_3, window_bounds = array<i64: 1, 128>}, {transform_indices = @transform_4, window_bounds = array<i64: 16, 8>}]} {
    %c0 = arith.constant 0 : index
    %c0_0 = arith.constant 0 : index
    %0 = vector.load %arg1[%c0, %c0_0] : memref<16x128xf32, #tpu.memory_space<vmem>>, vector<16x128xf32>
    %c0_1 = arith.constant 0 : index
    %c0_2 = arith.constant 0 : index
    %1 = vector.load %arg2[%c0_1, %c0_2] : memref<16x8xi32, #tpu.memory_space<vmem>>, vector<16x8xi32>
    %c0_3 = arith.constant 0 : index
    %c0_4 = arith.constant 0 : index
    %2 = vector.load %arg3[%c0_3, %c0_4] : memref<16x8xf32, #tpu.memory_space<vmem>>, vector<16x8xf32>
    %c0_5 = arith.constant 0 : index
    %c0_6 = arith.constant 0 : index
    %3 = vector.load %arg4[%c0_5, %c0_6] : memref<1x128xf32, #tpu.memory_space<vmem>>, vector<1x128xf32>
    %4 = math.absf %0 : vector<16x128xf32>
    %cst = arith.constant 0.000000e+00 : f32
    %5 = vector.broadcast %cst : f32 to vector<16x128xf32>
    %6 = arith.subf %5, %4 : vector<16x128xf32>
    %7 = math.exp %6 : vector<16x128xf32>
    %cst_7 = arith.constant 1.000000e+00 : f32
    %8 = vector.broadcast %cst_7 : f32 to vector<16x128xf32>
    %9 = arith.addf %8, %7 : vector<16x128xf32>
    %cst_8 = arith.constant 1.000000e+00 : f32
    %10 = vector.broadcast %cst_8 : f32 to vector<16x128xf32>
    %11 = arith.divf %10, %9 : vector<16x128xf32>
    %cst_9 = arith.constant 0.000000e+00 : f32
    %12 = vector.broadcast %cst_9 : f32 to vector<16x128xf32>
    %13 = arith.cmpf oge, %0, %12 : vector<16x128xf32>
    %14 = arith.mulf %7, %11 : vector<16x128xf32>
    %15 = arith.select %13, %11, %14 : vector<16x128xi1>, vector<16x128xf32>
    %cst_10 = arith.constant 0.000000e+00 : f32
    %16 = vector.broadcast %cst_10 : f32 to vector<16x128xf32>
    %17 = arith.maximumf %0, %16 : vector<16x128xf32>
    %18 = math.log1p %7 : vector<16x128xf32>
    %19 = arith.addf %17, %18 : vector<16x128xf32>
    %20 = arith.mulf %15, %15 : vector<16x128xf32>
    %21 = arith.mulf %19, %20 : vector<16x128xf32>
    %22 = tpu.iota {dimensions = array<i32: 1>} : vector<16x128xi32>
    %c4_i32 = arith.constant 4 : i32
    %23 = vector.broadcast %c4_i32 : i32 to vector<16x128xi32>
    %24 = arith.shrsi %22, %23 : vector<16x128xi32>
    %c15_i32 = arith.constant 15 : i32
    %25 = vector.broadcast %c15_i32 : i32 to vector<16x128xi32>
    %26 = arith.andi %22, %25 : vector<16x128xi32>
    %c0_i32 = arith.constant 0 : i32
    %27 = vector.broadcast %c0_i32 : i32 to vector<16x128xi32>
    %cst_11 = arith.constant 0.000000e+00 : f32
    %28 = vector.broadcast %cst_11 : f32 to vector<16x128xf32>
    %c0_i32_12 = arith.constant 0 : i32
    %29 = vector.broadcast %c0_i32_12 : i32 to vector<16x128xi32>
    %30 = arith.cmpi eq, %24, %29 : vector<16x128xi32>
    %31 = vector.extract_strided_slice %1 {offsets = [0, 0], sizes = [16, 1], strides = [1, 1]} : vector<16x8xi32> to vector<16x1xi32>
    %32 = vector.shape_cast %31 : vector<16x1xi32> to vector<16x1xi32>
    %33 = vector.broadcast %32 : vector<16x1xi32> to vector<16x128xi32>
    %34 = arith.select %30, %33, %27 : vector<16x128xi1>, vector<16x128xi32>
    %35 = vector.extract_strided_slice %2 {offsets = [0, 0], sizes = [16, 1], strides = [1, 1]} : vector<16x8xf32> to vector<16x1xf32>
    %36 = vector.shape_cast %35 : vector<16x1xf32> to vector<16x1xf32>
    %37 = vector.broadcast %36 : vector<16x1xf32> to vector<16x128xf32>
    %38 = arith.select %30, %37, %28 : vector<16x128xi1>, vector<16x128xf32>
    %c1_i32 = arith.constant 1 : i32
    %39 = vector.broadcast %c1_i32 : i32 to vector<16x128xi32>
    %40 = arith.cmpi eq, %24, %39 : vector<16x128xi32>
    %41 = vector.extract_strided_slice %1 {offsets = [0, 1], sizes = [16, 1], strides = [1, 1]} : vector<16x8xi32> to vector<16x1xi32>
    %42 = vector.shape_cast %41 : vector<16x1xi32> to vector<16x1xi32>
    %43 = vector.broadcast %42 : vector<16x1xi32> to vector<16x128xi32>
    %44 = arith.select %40, %43, %34 : vector<16x128xi1>, vector<16x128xi32>
    %45 = vector.extract_strided_slice %2 {offsets = [0, 1], sizes = [16, 1], strides = [1, 1]} : vector<16x8xf32> to vector<16x1xf32>
    %46 = vector.shape_cast %45 : vector<16x1xf32> to vector<16x1xf32>
    %47 = vector.broadcast %46 : vector<16x1xf32> to vector<16x128xf32>
    %48 = arith.select %40, %47, %38 : vector<16x128xi1>, vector<16x128xf32>
    %c2_i32 = arith.constant 2 : i32
    %49 = vector.broadcast %c2_i32 : i32 to vector<16x128xi32>
    %50 = arith.cmpi eq, %24, %49 : vector<16x128xi32>
    %51 = vector.extract_strided_slice %1 {offsets = [0, 2], sizes = [16, 1], strides = [1, 1]} : vector<16x8xi32> to vector<16x1xi32>
    %52 = vector.shape_cast %51 : vector<16x1xi32> to vector<16x1xi32>
    %53 = vector.broadcast %52 : vector<16x1xi32> to vector<16x128xi32>
    %54 = arith.select %50, %53, %44 : vector<16x128xi1>, vector<16x128xi32>
    %55 = vector.extract_strided_slice %2 {offsets = [0, 2], sizes = [16, 1], strides = [1, 1]} : vector<16x8xf32> to vector<16x1xf32>
    %56 = vector.shape_cast %55 : vector<16x1xf32> to vector<16x1xf32>
    %57 = vector.broadcast %56 : vector<16x1xf32> to vector<16x128xf32>
    %58 = arith.select %50, %57, %48 : vector<16x128xi1>, vector<16x128xf32>
    %c3_i32 = arith.constant 3 : i32
    %59 = vector.broadcast %c3_i32 : i32 to vector<16x128xi32>
    %60 = arith.cmpi eq, %24, %59 : vector<16x128xi32>
    %61 = vector.extract_strided_slice %1 {offsets = [0, 3], sizes = [16, 1], strides = [1, 1]} : vector<16x8xi32> to vector<16x1xi32>
    %62 = vector.shape_cast %61 : vector<16x1xi32> to vector<16x1xi32>
    %63 = vector.broadcast %62 : vector<16x1xi32> to vector<16x128xi32>
    %64 = arith.select %60, %63, %54 : vector<16x128xi1>, vector<16x128xi32>
    %65 = vector.extract_strided_slice %2 {offsets = [0, 3], sizes = [16, 1], strides = [1, 1]} : vector<16x8xf32> to vector<16x1xf32>
    %66 = vector.shape_cast %65 : vector<16x1xf32> to vector<16x1xf32>
    %67 = vector.broadcast %66 : vector<16x1xf32> to vector<16x128xf32>
    %68 = arith.select %60, %67, %58 : vector<16x128xi1>, vector<16x128xf32>
    %c4_i32_13 = arith.constant 4 : i32
    %69 = vector.broadcast %c4_i32_13 : i32 to vector<16x128xi32>
    %70 = arith.cmpi eq, %24, %69 : vector<16x128xi32>
    %71 = vector.extract_strided_slice %1 {offsets = [0, 4], sizes = [16, 1], strides = [1, 1]} : vector<16x8xi32> to vector<16x1xi32>
    %72 = vector.shape_cast %71 : vector<16x1xi32> to vector<16x1xi32>
    %73 = vector.broadcast %72 : vector<16x1xi32> to vector<16x128xi32>
    %74 = arith.select %70, %73, %64 : vector<16x128xi1>, vector<16x128xi32>
    %75 = vector.extract_strided_slice %2 {offsets = [0, 4], sizes = [16, 1], strides = [1, 1]} : vector<16x8xf32> to vector<16x1xf32>
    %76 = vector.shape_cast %75 : vector<16x1xf32> to vector<16x1xf32>
    %77 = vector.broadcast %76 : vector<16x1xf32> to vector<16x128xf32>
    %78 = arith.select %70, %77, %68 : vector<16x128xi1>, vector<16x128xf32>
    %c5_i32 = arith.constant 5 : i32
    %79 = vector.broadcast %c5_i32 : i32 to vector<16x128xi32>
    %80 = arith.cmpi eq, %24, %79 : vector<16x128xi32>
    %81 = vector.extract_strided_slice %1 {offsets = [0, 5], sizes = [16, 1], strides = [1, 1]} : vector<16x8xi32> to vector<16x1xi32>
    %82 = vector.shape_cast %81 : vector<16x1xi32> to vector<16x1xi32>
    %83 = vector.broadcast %82 : vector<16x1xi32> to vector<16x128xi32>
    %84 = arith.select %80, %83, %74 : vector<16x128xi1>, vector<16x128xi32>
    %85 = vector.extract_strided_slice %2 {offsets = [0, 5], sizes = [16, 1], strides = [1, 1]} : vector<16x8xf32> to vector<16x1xf32>
    %86 = vector.shape_cast %85 : vector<16x1xf32> to vector<16x1xf32>
    %87 = vector.broadcast %86 : vector<16x1xf32> to vector<16x128xf32>
    %88 = arith.select %80, %87, %78 : vector<16x128xi1>, vector<16x128xf32>
    %c6_i32 = arith.constant 6 : i32
    %89 = vector.broadcast %c6_i32 : i32 to vector<16x128xi32>
    %90 = arith.cmpi eq, %24, %89 : vector<16x128xi32>
    %91 = vector.extract_strided_slice %1 {offsets = [0, 6], sizes = [16, 1], strides = [1, 1]} : vector<16x8xi32> to vector<16x1xi32>
    %92 = vector.shape_cast %91 : vector<16x1xi32> to vector<16x1xi32>
    %93 = vector.broadcast %92 : vector<16x1xi32> to vector<16x128xi32>
    %94 = arith.select %90, %93, %84 : vector<16x128xi1>, vector<16x128xi32>
    %95 = vector.extract_strided_slice %2 {offsets = [0, 6], sizes = [16, 1], strides = [1, 1]} : vector<16x8xf32> to vector<16x1xf32>
    %96 = vector.shape_cast %95 : vector<16x1xf32> to vector<16x1xf32>
    %97 = vector.broadcast %96 : vector<16x1xf32> to vector<16x128xf32>
    %98 = arith.select %90, %97, %88 : vector<16x128xi1>, vector<16x128xf32>
    %c7_i32 = arith.constant 7 : i32
    %99 = vector.broadcast %c7_i32 : i32 to vector<16x128xi32>
    %100 = arith.cmpi eq, %24, %99 : vector<16x128xi32>
    %101 = vector.extract_strided_slice %1 {offsets = [0, 7], sizes = [16, 1], strides = [1, 1]} : vector<16x8xi32> to vector<16x1xi32>
    %102 = vector.shape_cast %101 : vector<16x1xi32> to vector<16x1xi32>
    %103 = vector.broadcast %102 : vector<16x1xi32> to vector<16x128xi32>
    %104 = arith.select %100, %103, %94 : vector<16x128xi1>, vector<16x128xi32>
    %105 = vector.extract_strided_slice %2 {offsets = [0, 7], sizes = [16, 1], strides = [1, 1]} : vector<16x8xf32> to vector<16x1xf32>
    %106 = vector.shape_cast %105 : vector<16x1xf32> to vector<16x1xf32>
    %107 = vector.broadcast %106 : vector<16x1xf32> to vector<16x128xf32>
    %108 = arith.select %100, %107, %98 : vector<16x128xi1>, vector<16x128xf32>
    %c0_i32_14 = arith.constant 0 : i32
    %109 = vector.broadcast %c0_i32_14 : i32 to vector<16x128xi32>
    %110 = arith.cmpi sge, %104, %109 : vector<16x128xi32>
    %c16_i32 = arith.constant 16 : i32
    %111 = vector.broadcast %c16_i32 : i32 to vector<16x128xi32>
    %112 = arith.cmpi slt, %104, %111 : vector<16x128xi32>
    %113 = arith.andi %110, %112 : vector<16x128xi1>
    %114 = arith.cmpi eq, %26, %104 : vector<16x128xi32>
    %115 = arith.andi %113, %114 : vector<16x128xi1>
    %116 = arith.mulf %108, %0 : vector<16x128xf32>
    %117 = arith.subf %19, %116 : vector<16x128xf32>
    %118 = arith.subf %108, %15 : vector<16x128xf32>
    %119 = arith.mulf %118, %118 : vector<16x128xf32>
    %120 = arith.mulf %117, %119 : vector<16x128xf32>
    %121 = arith.select %115, %120, %21 : vector<16x128xi1>, vector<16x128xf32>
    %122 = vector.broadcast %3 : vector<1x128xf32> to vector<16x128xf32>
    %123 = arith.mulf %121, %122 : vector<16x128xf32>
    %124 = tpu.iota {dimensions = array<i32: 1>} : vector<16x8xi32>
    %cst_15 = arith.constant 0.000000e+00 : f32
    %125 = vector.broadcast %cst_15 : f32 to vector<16x8xf32>
    %126 = vector.extract_strided_slice %123 {offsets = [0, 0], sizes = [16, 16], strides = [1, 1]} : vector<16x128xf32> to vector<16x16xf32>
    %cst_16 = arith.constant dense<0.000000e+00> : vector<16xf32>
    %127 = vector.multi_reduction <add>, %126, %cst_16 [1] : vector<16x16xf32> to vector<16xf32>
    %128 = vector.shape_cast %127 : vector<16xf32> to vector<16x1xf32>
    %c0_i32_17 = arith.constant 0 : i32
    %129 = vector.broadcast %c0_i32_17 : i32 to vector<16x8xi32>
    %130 = arith.cmpi eq, %124, %129 : vector<16x8xi32>
    %131 = vector.shape_cast %128 : vector<16x1xf32> to vector<16x1xf32>
    %132 = vector.broadcast %131 : vector<16x1xf32> to vector<16x8xf32>
    %133 = arith.select %130, %132, %125 : vector<16x8xi1>, vector<16x8xf32>
    %134 = vector.extract_strided_slice %123 {offsets = [0, 16], sizes = [16, 16], strides = [1, 1]} : vector<16x128xf32> to vector<16x16xf32>
    %cst_18 = arith.constant dense<0.000000e+00> : vector<16xf32>
    %135 = vector.multi_reduction <add>, %134, %cst_18 [1] : vector<16x16xf32> to vector<16xf32>
    %136 = vector.shape_cast %135 : vector<16xf32> to vector<16x1xf32>
    %c1_i32_19 = arith.constant 1 : i32
    %137 = vector.broadcast %c1_i32_19 : i32 to vector<16x8xi32>
    %138 = arith.cmpi eq, %124, %137 : vector<16x8xi32>
    %139 = vector.shape_cast %136 : vector<16x1xf32> to vector<16x1xf32>
    %140 = vector.broadcast %139 : vector<16x1xf32> to vector<16x8xf32>
    %141 = arith.select %138, %140, %133 : vector<16x8xi1>, vector<16x8xf32>
    %142 = vector.extract_strided_slice %123 {offsets = [0, 32], sizes = [16, 16], strides = [1, 1]} : vector<16x128xf32> to vector<16x16xf32>
    %cst_20 = arith.constant dense<0.000000e+00> : vector<16xf32>
    %143 = vector.multi_reduction <add>, %142, %cst_20 [1] : vector<16x16xf32> to vector<16xf32>
    %144 = vector.shape_cast %143 : vector<16xf32> to vector<16x1xf32>
    %c2_i32_21 = arith.constant 2 : i32
    %145 = vector.broadcast %c2_i32_21 : i32 to vector<16x8xi32>
    %146 = arith.cmpi eq, %124, %145 : vector<16x8xi32>
    %147 = vector.shape_cast %144 : vector<16x1xf32> to vector<16x1xf32>
    %148 = vector.broadcast %147 : vector<16x1xf32> to vector<16x8xf32>
    %149 = arith.select %146, %148, %141 : vector<16x8xi1>, vector<16x8xf32>
    %150 = vector.extract_strided_slice %123 {offsets = [0, 48], sizes = [16, 16], strides = [1, 1]} : vector<16x128xf32> to vector<16x16xf32>
    %cst_22 = arith.constant dense<0.000000e+00> : vector<16xf32>
    %151 = vector.multi_reduction <add>, %150, %cst_22 [1] : vector<16x16xf32> to vector<16xf32>
    %152 = vector.shape_cast %151 : vector<16xf32> to vector<16x1xf32>
    %c3_i32_23 = arith.constant 3 : i32
    %153 = vector.broadcast %c3_i32_23 : i32 to vector<16x8xi32>
    %154 = arith.cmpi eq, %124, %153 : vector<16x8xi32>
    %155 = vector.shape_cast %152 : vector<16x1xf32> to vector<16x1xf32>
    %156 = vector.broadcast %155 : vector<16x1xf32> to vector<16x8xf32>
    %157 = arith.select %154, %156, %149 : vector<16x8xi1>, vector<16x8xf32>
    %158 = vector.extract_strided_slice %123 {offsets = [0, 64], sizes = [16, 16], strides = [1, 1]} : vector<16x128xf32> to vector<16x16xf32>
    %cst_24 = arith.constant dense<0.000000e+00> : vector<16xf32>
    %159 = vector.multi_reduction <add>, %158, %cst_24 [1] : vector<16x16xf32> to vector<16xf32>
    %160 = vector.shape_cast %159 : vector<16xf32> to vector<16x1xf32>
    %c4_i32_25 = arith.constant 4 : i32
    %161 = vector.broadcast %c4_i32_25 : i32 to vector<16x8xi32>
    %162 = arith.cmpi eq, %124, %161 : vector<16x8xi32>
    %163 = vector.shape_cast %160 : vector<16x1xf32> to vector<16x1xf32>
    %164 = vector.broadcast %163 : vector<16x1xf32> to vector<16x8xf32>
    %165 = arith.select %162, %164, %157 : vector<16x8xi1>, vector<16x8xf32>
    %166 = vector.extract_strided_slice %123 {offsets = [0, 80], sizes = [16, 16], strides = [1, 1]} : vector<16x128xf32> to vector<16x16xf32>
    %cst_26 = arith.constant dense<0.000000e+00> : vector<16xf32>
    %167 = vector.multi_reduction <add>, %166, %cst_26 [1] : vector<16x16xf32> to vector<16xf32>
    %168 = vector.shape_cast %167 : vector<16xf32> to vector<16x1xf32>
    %c5_i32_27 = arith.constant 5 : i32
    %169 = vector.broadcast %c5_i32_27 : i32 to vector<16x8xi32>
    %170 = arith.cmpi eq, %124, %169 : vector<16x8xi32>
    %171 = vector.shape_cast %168 : vector<16x1xf32> to vector<16x1xf32>
    %172 = vector.broadcast %171 : vector<16x1xf32> to vector<16x8xf32>
    %173 = arith.select %170, %172, %165 : vector<16x8xi1>, vector<16x8xf32>
    %174 = vector.extract_strided_slice %123 {offsets = [0, 96], sizes = [16, 16], strides = [1, 1]} : vector<16x128xf32> to vector<16x16xf32>
    %cst_28 = arith.constant dense<0.000000e+00> : vector<16xf32>
    %175 = vector.multi_reduction <add>, %174, %cst_28 [1] : vector<16x16xf32> to vector<16xf32>
    %176 = vector.shape_cast %175 : vector<16xf32> to vector<16x1xf32>
    %c6_i32_29 = arith.constant 6 : i32
    %177 = vector.broadcast %c6_i32_29 : i32 to vector<16x8xi32>
    %178 = arith.cmpi eq, %124, %177 : vector<16x8xi32>
    %179 = vector.shape_cast %176 : vector<16x1xf32> to vector<16x1xf32>
    %180 = vector.broadcast %179 : vector<16x1xf32> to vector<16x8xf32>
    %181 = arith.select %178, %180, %173 : vector<16x8xi1>, vector<16x8xf32>
    %182 = vector.extract_strided_slice %123 {offsets = [0, 112], sizes = [16, 16], strides = [1, 1]} : vector<16x128xf32> to vector<16x16xf32>
    %cst_30 = arith.constant dense<0.000000e+00> : vector<16xf32>
    %183 = vector.multi_reduction <add>, %182, %cst_30 [1] : vector<16x16xf32> to vector<16xf32>
    %184 = vector.shape_cast %183 : vector<16xf32> to vector<16x1xf32>
    %c7_i32_31 = arith.constant 7 : i32
    %185 = vector.broadcast %c7_i32_31 : i32 to vector<16x8xi32>
    %186 = arith.cmpi eq, %124, %185 : vector<16x8xi32>
    %187 = vector.shape_cast %184 : vector<16x1xf32> to vector<16x1xf32>
    %188 = vector.broadcast %187 : vector<16x1xf32> to vector<16x8xf32>
    %189 = arith.select %186, %188, %181 : vector<16x8xi1>, vector<16x8xf32>
    %c0_32 = arith.constant 0 : index
    %c0_33 = arith.constant 0 : index
    %190 = vector.load %arg5[%c0_32, %c0_33] : memref<16x8xf32, #tpu.memory_space<vmem>>, vector<16x8xf32>
    tpu.vector_store %arg5[%c0_32, %c0_33], %189 {strides = array<i32>} : memref<16x8xf32, #tpu.memory_space<vmem>>, vector<16x8xf32>,
    return
  }
  func.func @transform_0(%arg0: i32) -> (i32, i32) {
    %c0_i32 = arith.constant 0 : i32
    %c0_i32_0 = arith.constant 0 : i32
    return %arg0, %c0_i32 : i32, i32
  }
  func.func @transform_1(%arg0: i32) -> (i32, i32) {
    %c0_i32 = arith.constant 0 : i32
    %c0_i32_0 = arith.constant 0 : i32
    return %arg0, %c0_i32 : i32, i32
  }
  func.func @transform_2(%arg0: i32) -> (i32, i32) {
    %c0_i32 = arith.constant 0 : i32
    %c0_i32_0 = arith.constant 0 : i32
    return %arg0, %c0_i32 : i32, i32
  }
  func.func @transform_3(%arg0: i32) -> (i32, i32) {
    %c0_i32 = arith.constant 0 : i32
    %c0_i32_0 = arith.constant 0 : i32
    %c0_i32_1 = arith.constant 0 : i32
    return %c0_i32, %c0_i32_0 : i32, i32
  }
  func.func @transform_4(%arg0: i32) -> (i32, i32) {
    %c0_i32 = arith.constant 0 : i32
    %c0_i32_0 = arith.constant 0 : i32
    return %arg0, %c0_i32 : i32, i32
  }
}

</mosaic_0001>

<bundles_post_ra>
// kernel: tpu_custom_call.1
= control target key start
LH: loop header
LB: loop body
LE: loop exit
PB: predicated region body
PF: predicated region fallthrough
CT: control target
= control target key end

     0   :  { %s801_s15 = smov 0   ;;  %s1034_s0 = inlined_call_operand.vmem [shape: f32[32,128], index: 0, kind: input, shape index: {}]   ;;  %s1035_s1 = inlined_call_operand.vmem [shape: s32[32,8], index: 1, kind: input, shape index: {}]   ;;  %s1036_s2 = inlined_call_operand.vmem [shape: f32[32,8], index: 2, kind: input, shape index: {}]   ;;  %s1037_s3 = inlined_call_operand.vmem [shape: f32[1,128], index: 3, kind: input, shape index: {}]   ;;  %s1038_s4 = inlined_call_operand.vmem [shape: f32[32,8], index: 4, kind: output, shape index: {}]  }
   0x1 LB: > { %s686_s16 = sadd.s32 4294967295, %s759_s15   ;;  %p690_p0 = scmp.ge.s32.totalorder %s759_s15, 1  ;;  %s759_s15 = sphi %s801_s15, %s14_s15  }
   0x2   : > { %p185_p1 = scmp.lt.s32.totalorder %s759_s15, 3 }
   0x4   : > { %p186_p2 = pnand %p690_p0, %p185_p1 }
   0x5   : > { %s691_s17 = sshll.u32 (!%p186_p2), %s686_s16, 1  ;;  %v761_v0 = vmov (!%p186_p2), 0   ;;  %v762_v5 = vmov (!%p186_p2), 1   ;;  %v763_v6 = vmov (!%p186_p2), 2   ;;  %v764_v7 = vmov (!%p186_p2), 3   ;;  %s769_s30 = smov (!%p186_p2), 112  }
   0x6   : > { %189 = sbr.rel (%p186_p2) target bundleno = 592 (0x250), region = 36  ;;  %726 = vset.pattern.permute.xlu1 (!%p186_p2), %v761_v0  ;;  %725 = vset.pattern.permute.xlu0 (!%p186_p2), %v761_v0  ;;  %p222_p3 = scmp.lt.s32.totalorder (!%p186_p2), %s691_s17, 3  ;;  %v765_v8 = vmov (!%p186_p2), 4   ;;  %v766_v9 = vmov (!%p186_p2), 5   ;;  %v767_v10 = vmov (!%p186_p2), 6   ;;  %v768_v11 = vmov (!%p186_p2), 7  }
   0x7   : > { %v298_v40 = vlaneseq (!%p186_p2)  ;;  %s770_s5 = smov (!%p186_p2), 96   ;;  %s771_s6 = smov (!%p186_p2), 80  }
   0x8   : > { %s772_s7 = smov (!%p186_p2), 64   ;;  %s773_s8 = smov (!%p186_p2), 48  }
   0x9   : > { %v853_v44 = vand.u32 (!%p186_p2), 127, %v298_v40  ;;  %s774_s9 = smov (!%p186_p2), 32   ;;  %s775_s10 = smov (!%p186_p2), 16  }
   0xb   : > { %v861_v49 = vshra.s32 (!%p186_p2), %v853_v44, 4 }
   0xd   : > { %s1044_s17 = smov (!%p222_p3, %s691_s17), 3  ;;  %vm302_vm0 = vcmp.eq.s32.totalorder %v861_v49, 0  ;;  %vm323_vm1 = vcmp.eq.s32.totalorder %v861_v49, 1  ;;  %vm342_vm2 = vcmp.eq.s32.totalorder %v861_v49, 2  ;;  %vm361_vm5 = vcmp.eq.s32.totalorder %v861_v49, 3 }
   0xe   : > { %s809_s18 = sshll.u32 %s1044_s17, 3  ;;  %vm380_vm6 = vcmp.eq.s32.totalorder %v861_v49, 4  ;;  %vm399_vm7 = vcmp.eq.s32.totalorder %v861_v49, 5  ;;  %vm418_vm8 = vcmp.eq.s32.totalorder %v861_v49, 6  ;;  %vm437_vm9 = vcmp.eq.s32.totalorder %v861_v49, 7 }
   0xf   : > { %s237_s21 = scalar_lea.vmem %s1036_s2, %s809_s18  ;;  %s231_s24 = scalar_lea.vmem %s1035_s1, %s809_s18 }
  0x10   : > { %v249_v1 = vld [vmem:[%s237_s21] sm:$0xff]  ;;  %v250_v3 = vld [vmem:[%s237_s21 + $0x8] sm:$0xff]  ;;  %s225_s27 = scalar_lea.vmem %s1034_s0, %s809_s18  ;;  %s243_s13 = scalar_lea.vmem %s1038_s4, %s809_s18 }
  0x11   : > { %v247_v2 = vld [vmem:[%s231_s24] sm:$0xff]  ;;  %313 = vperm.xlu1 %726, %v249_v1   ;;  %v248_v4 = vld [vmem:[%s231_s24 + $0x8] sm:$0xff] }
  0x12   : > { %304 = vperm.xlu0 %725, %v247_v2   ;;  %v829_v18 = vld [vmem:[%s225_s27 + $0x8] sm:$0xff]  ;;  %v836_v27 = vld [vmem:[%s225_s27] sm:$0xff] }
  0x13   : > { %v253_v21 = vand.u32 2147483647, %v829_v18  ;;  %v252_v29 = vand.u32 2147483647, %v836_v27  ;;  %vm267_vm3 = vcmp.ge.f32.partialorder %v829_v18, 0.0  ;;  %vm266_vm11 = vcmp.ge.f32.partialorder %v836_v27, 0.0 }
  0x15   : > { %318 = vperm.xlu1 %726, %v250_v3   ;;  %v255_v23 = vsub.f32 0.0, %v253_v21  ;;  %v254_v31 = vsub.f32 0.0, %v252_v29 }
  0x16   : > { %307 = vperm.xlu0 %725, %v248_v4  }
  0x17   : > { %v258_v26 = vmul.f32 1.442695, %v255_v23  ;;  %v256_v34 = vmul.f32 1.442695, %v254_v31 }
  0x19   : > { %728 = vset.pattern.permute.xlu1 %v762_v5  ;;  %741 = vpow2.f32 %v258_v26 }
  0x1a   : > { %727 = vset.pattern.permute.xlu0 %v762_v5  ;;  %328 = vperm.xlu1 %728, %v248_v4   ;;  %743 = vpow2.f32 %v256_v34  ;;  %v273_v5 = vmax.f32 %v829_v18, 0.0 }
  0x1b   : > { %325 = vperm.xlu0 %727, %v247_v2  }
  0x1e   : > { %333 = vperm.xlu1 %728, %v249_v1  }
  0x1f   : > { %337 = vperm.xlu0 %727, %v250_v3  }
  0x22   : > { %729 = vset.pattern.permute.xlu1 %v763_v6 }
  0x23   : > { %730 = vset.pattern.permute.xlu0 %v763_v6  ;;  %344 = vperm.xlu1 %729, %v247_v2   ;;  %v742_v35 = vpop.eup %741 }
  0x24   : > { %347 = vperm.xlu0 %730, %v248_v4   ;;  %v261_v38 = vadd.f32 1.0, %v742_v35  ;;  %v851_v43 = vpop.eup %743  ;;  %v286_v47 = vmul.f32 -0.5, %v742_v35  ;;  %v289_v55 = vand.u32 2147483647, %v742_v35 }
  0x25   : > { %v260_v48 = vadd.f32 1.0, %v851_v43  ;;  %v280_v23 = vand.u32 2147483647, %v851_v43 }
  0x26   : > { %745 = vrcp.f32 %v261_v38  ;;  %v287_v53 = vadd.f32 1.0, %v286_v47  ;;  %vm875_vm4 = vcmp.lt.f32.partialorder %v289_v55, 0.0004427343 }
  0x27   : > { %352 = vperm.xlu1 %729, %v249_v1   ;;  %747 = vlog2.f32 %v261_v38  ;;  %vm925_vm10 = vcmp.lt.f32.partialorder %v280_v23, 0.0004427343 }
  0x28   : > { %731 = vset.pattern.permute.xlu0 %v764_v7  ;;  %749 = vlog2.f32 %v260_v48  ;;  %v288_v61 = vmul.f32 %v742_v35, %v287_v53 }
  0x29   : > { %363 = vperm.xlu0 %731, %v247_v2   ;;  %751 = vrcp.f32 %v260_v48 }
  0x2b   : > { %356 = vperm.xlu1 %729, %v250_v3  }
  0x2d   : > { %375 = vperm.xlu0 %731, %v250_v3  }
  0x2f   : > { %732 = vset.pattern.permute.xlu1 %v764_v7 }
  0x30   : > { %366 = vperm.xlu1 %732, %v248_v4   ;;  %v746_v51 = vpop.eup %745 }
  0x31   : > { %734 = vset.pattern.permute.xlu0 %v765_v8  ;;  %v748_v54 = vpop.eup %747  ;;  %v269_v56 = vmul.f32 %v746_v51, %v742_v35 }
  0x32   : > { %385 = vperm.xlu0 %734, %v248_v4   ;;  %v285_v60 = vmul.f32 0.6931472, %v748_v54  ;;  %v272_v54 = vmax.f32 %v836_v27, 0.0 }
  0x33   : > { %v271_v7 = vsel %vm267_vm3, %v746_v51, %v269_v56 }
  0x34   : > { %371 = vperm.xlu1 %732, %v249_v1  }
  0x36   : > { %735 = vset.pattern.permute.xlu0 %v766_v9 }
  0x37   : > { %401 = vperm.xlu0 %735, %v247_v2  }
  0x38   : > { %733 = vset.pattern.permute.xlu1 %v765_v8  ;;  %v291_v8 = vsel %vm875_vm4, %v288_v61, %v285_v60 }
  0x39   : > { %382 = vperm.xlu1 %733, %v247_v2   ;;  %v293_v26 = vadd.f32 %v291_v8, %v273_v5 }
  0x3b   : > { %413 = vperm.xlu0 %735, %v250_v3  }
  0x3d   : > { %390 = vperm.xlu1 %733, %v249_v1  }
  0x3f   : > { %738 = vset.pattern.permute.xlu0 %v767_v10 }
  0x40   : > { %423 = vperm.xlu0 %738, %v248_v4  }
  0x41   : > { %394 = vperm.xlu1 %733, %v250_v3  }
  0x44   : > { %739 = vset.pattern.permute.xlu0 %v768_v11 }
  0x45   : > { %439 = vperm.xlu0 %739, %v247_v2   ;;  %736 = vset.pattern.permute.xlu1 %v766_v9 }
  0x46   : > { %404 = vperm.xlu1 %736, %v248_v4  }
  0x49   : > { %451 = vperm.xlu0 %739, %v250_v3  }
  0x4a   : > { %409 = vperm.xlu1 %736, %v249_v1  }
  0x4e   : > { %737 = vset.pattern.permute.xlu1 %v767_v10 }
  0x4f   : > { %420 = vperm.xlu1 %737, %v247_v2  }
  0x53   : > { %428 = vperm.xlu1 %737, %v249_v1  }
  0x57   : > { %432 = vperm.xlu1 %737, %v250_v3  }
  0x5b   : > { %740 = vset.pattern.permute.xlu1 %v768_v11 }
  0x5c   : > { %442 = vperm.xlu1 %740, %v248_v4  }
  0x60   : > { %447 = vperm.xlu1 %740, %v249_v1   ;;  %v277_v1 = vmul.f32 -0.5, %v851_v43 }
  0x90   : > { %v819_v12 = vpop.permute.xlu1 %313 }
  0x91   : > { %v305_v14 = vpop.permute.xlu0 %304 }
  0x92   : > { %v309_v57 = vsel %vm302_vm0, %v305_v14, 0  ;;  %v278_v14 = vadd.f32 1.0, %v277_v1 }
  0x94   : > { %v319_v13 = vpop.permute.xlu1 %318 }
  0x95   : > { %v308_v16 = vpop.permute.xlu0 %307  ;;  %v322_v58 = vsel %vm302_vm0, %v319_v13, 0.0  ;;  %v295_v13 = vmul.f32 %v271_v7, %v271_v7 }
  0x96   : > { %v310_v2 = vsel %vm302_vm0, %v308_v16, 0 }
  0x97   : > { %v297_v35 = vmul.f32 %v295_v13, %v293_v26 }
  0x99   : > { %v821_v15 = vpop.permute.xlu1 %328 }
  0x9a   : > { %v326_v19 = vpop.permute.xlu0 %325  ;;  %v331_v9 = vsel %vm323_vm1, %v821_v15, %v310_v2  ;;  %v750_v15 = vpop.eup %749 }
  0x9b   : > { %v330_v4 = vsel %vm323_vm1, %v326_v19, %v309_v57  ;;  %v752_v31 = vpop.eup %751  ;;  %v276_v38 = vmul.f32 0.6931472, %v750_v15 }
  0x9d   : > { %v827_v17 = vpop.permute.xlu1 %333 }
  0x9e   : > { %v338_v24 = vpop.permute.xlu0 %337 }
  0x9f   : > { %v341_v62 = vsel %vm323_vm1, %v338_v24, %v322_v58 }
  0xa2   : > { %v831_v20 = vpop.permute.xlu1 %344 }
  0xa3   : > { %v838_v28 = vpop.permute.xlu0 %347  ;;  %v349_v16 = vsel %vm342_vm2, %v831_v20, %v330_v4 }
  0xa4   : > { %v350_v19 = vsel %vm342_vm2, %v838_v28, %v331_v9  ;;  %v301_v28 = vand.u32 15, %v853_v44 }
  0xa6   : > { %v834_v22 = vpop.permute.xlu1 %352 }
  0xa8   : > { %v843_v32 = vpop.permute.xlu0 %363 }
  0xa9   : > { %v368_v24 = vsel %vm361_vm5, %v843_v32, %v349_v16 }
  0xaa   : > { %v357_v25 = vpop.permute.xlu1 %356 }
  0xab   : > { %v360_v3 = vsel %vm342_vm2, %v357_v25, %v341_v62 }
  0xac   : > { %v376_v37 = vpop.permute.xlu0 %375 }
  0xad   : > { %v379_v10 = vsel %vm361_vm5, %v376_v37, %v360_v3 }
  0xaf   : > { %v841_v30 = vpop.permute.xlu1 %366 }
  0xb0   : > { %v369_v25 = vsel %vm361_vm5, %v841_v30, %v350_v19  ;;  %v279_v30 = vmul.f32 %v851_v43, %v278_v14 }
  0xb1   : > { %v849_v41 = vpop.permute.xlu0 %385 }
  0xb2   : > { %v282_v60 = vsel %vm925_vm10, %v279_v30, %v276_v38  ;;  %vm555_vm10 = vcmp.eq.s32.totalorder %v853_v44, 4 }
  0xb3   : > { %v845_v33 = vpop.permute.xlu1 %371  ;;  %v292_v0 = vadd.f32 %v282_v60, %v272_v54 }
  0xb6   : > { %v855_v45 = vpop.permute.xlu0 %401 }
  0xb8   : > { %v383_v36 = vpop.permute.xlu1 %382 }
  0xb9   : > { %v387_v20 = vsel %vm380_vm6, %v383_v36, %v368_v24  ;;  %v388_v36 = vsel %vm380_vm6, %v849_v41, %v369_v25 }
  0xba   : > { %v414_v50 = vpop.permute.xlu0 %413  ;;  %v406_v47 = vsel %vm399_vm7, %v855_v45, %v387_v20 }
  0xbc   : > { %v847_v39 = vpop.permute.xlu1 %390 }
  0xbf   : > { %v424_v59 = vpop.permute.xlu0 %423 }
  0xc0   : > { %v395_v42 = vpop.permute.xlu1 %394 }
  0xc1   : > { %v398_v21 = vsel %vm380_vm6, %v395_v42, %v379_v10  ;;  %v321_v42 = vsel %vm302_vm0, %v819_v12, 0.0 }
  0xc2   : > { %v417_v34 = vsel %vm399_vm7, %v414_v50, %v398_v21  ;;  %v340_v50 = vsel %vm323_vm1, %v827_v17, %v321_v42 }
  0xc3   : > { %v359_v45 = vsel %vm342_vm2, %v834_v22, %v340_v50 }
  0xc4   : > { %v440_v6 = vpop.permute.xlu0 %439  ;;  %v378_v17 = vsel %vm361_vm5, %v845_v33, %v359_v45 }
  0xc5   : > { %v857_v46 = vpop.permute.xlu1 %404  ;;  %v397_v22 = vsel %vm380_vm6, %v847_v39, %v378_v17  ;;  %v699_v39 = vld [vmem:[%s1037_s3] ss:$0 sm:$0xff]  ;;  %vm486_vm6 = vcmask 130048  }
  0xc6   : > { %v407_v41 = vsel %vm399_vm7, %v857_v46, %v388_v36  ;;  %v268_v46 = vmul.f32 %v752_v31, %v851_v43 }
  0xc7   : > { %v426_v55 = vsel %vm418_vm8, %v424_v59, %v407_v41 }
  0xc8   : > { %v452_v29 = vpop.permute.xlu0 %451  ;;  %v270_v61 = vsel %vm266_vm11, %v752_v31, %v268_v46  ;;  %vm540_vm11 = vcmp.eq.s32.totalorder %v853_v44, 3 }
  0xc9   : > { %v863_v52 = vpop.permute.xlu1 %409  ;;  %v294_v1 = vmul.f32 %v270_v61, %v270_v61 }
  0xca   : > { %v416_v59 = vsel %vm399_vm7, %v863_v52, %v397_v22  ;;  %vm493_vm7 = vcmp.eq.s32.totalorder %v853_v44, 0 }
  0xce   : > { %v421_v63 = vpop.permute.xlu1 %420 }
  0xcf   : > { %v425_v51 = vsel %vm418_vm8, %v421_v63, %v406_v47 }
  0xd0   : > { %v444_v58 = vsel %vm437_vm9, %v440_v6, %v425_v51  ;;  %v296_v6 = vmul.f32 %v294_v1, %v292_v0 }
  0xd1   : > { %vm456_vm1 = vcmp.ge.s32.totalorder %v444_v58, 0  ;;  %vm458_vm2 = vcmp.lt.s32.totalorder %v444_v58, 16  ;;  %vm462_vm4 = vcmp.eq.s32.totalorder %v301_v28, %v444_v58 }
  0xd2   : > { %v429_v11 = vpop.permute.xlu1 %428  ;;  %vm460_vm3 = vmand %vm456_vm1, %vm458_vm2 }
  0xd3   : > { %v435_v62 = vsel %vm418_vm8, %v429_v11, %v416_v59  ;;  %vm464_vm5 = vmand %vm460_vm3, %vm462_vm4 }
  0xd6   : > { %v433_v32 = vpop.permute.xlu1 %432 }
  0xd7   : > { %v436_v37 = vsel %vm418_vm8, %v433_v32, %v417_v34  ;;  %vm510_vm8 = vcmp.eq.s32.totalorder %v853_v44, 1 }
  0xd8   : > { %v455_v48 = vsel %vm437_vm9, %v452_v29, %v436_v37 }
  0xd9   : > { %v467_v12 = vmul.f32 %v455_v48, %v829_v18  ;;  %v471_v53 = vsub.f32 %v455_v48, %v271_v7 }
  0xdb   : > { %v469_v56 = vsub.f32 %v293_v26, %v467_v12  ;;  %v473_v18 = vmul.f32 %v471_v53, %v471_v53  ;;  %v443_v57 = vpop.permute.xlu1 %442 }
  0xdc   : > { %v445_v43 = vsel %vm437_vm9, %v443_v57, %v426_v55 }
  0xdd   : > { %v475_v33 = vmul.f32 %v473_v18, %v469_v56  ;;  %vm457_vm12 = vcmp.ge.s32.totalorder %v445_v43, 0  ;;  %vm459_vm13 = vcmp.lt.s32.totalorder %v445_v43, 16  ;;  %vm463_vm14 = vcmp.eq.s32.totalorder %v301_v28, %v445_v43 }
  0xde   : > { %vm461_vm15 = vmand %vm457_vm12, %vm459_vm13  ;;  %vm570_vm12 = vcmp.eq.s32.totalorder %v853_v44, 5  ;;  %vm585_vm13 = vcmp.eq.s32.totalorder %v853_v44, 6 }
  0xdf   : > { %vm465_vm0 = vmand %vm461_vm15, %vm463_vm14  ;;  %v448_v63 = vpop.permute.xlu1 %447  ;;  %vm600_vm14 = vcmp.eq.s32.totalorder %v853_v44, 7  ;;  %vm603_vm15 = vcmask 64512  }
  0xe0   : > { %v477_v2 = vsel %vm465_vm0, %v475_v33, %v297_v35  ;;  %v454_v52 = vsel %vm437_vm9, %v448_v63, %v435_v62  ;;  %vm525_vm9 = vcmp.eq.s32.totalorder %v853_v44, 2 }
  0xe1   : > { %v485_v3 = vmul.f32 %v699_v39, %v477_v2  ;;  %v466_v4 = vmul.f32 %v454_v52, %v836_v27  ;;  %v470_v5 = vsub.f32 %v454_v52, %v270_v61 }
  0xe3   : > { %v468_v7 = vsub.f32 %v292_v0, %v466_v4  ;;  %v472_v8 = vmul.f32 %v470_v5, %v470_v5  ;;  %500 = vrot.lane.b32.xlu1 %v485_v3, %s769_s30  ;;  %v490_v27 = vsel %vm486_vm6, %v485_v3, 0.0 }
  0xe5   : > { %v474_v9 = vmul.f32 %v472_v8, %v468_v7 }
  0xe7   : > { %v476_v10 = vsel %vm464_vm5, %v474_v9, %v296_v6  ;;  %515 = vrot.lane.b32.xlu1 %v485_v3, %s770_s5 }
  0xe8   : > { %v484_v11 = vmul.f32 %v699_v39, %v476_v10 }
  0xea   : > { %498 = vrot.lane.b32.xlu0 %v484_v11, %s769_s30  ;;  %v487_v49 = vsel %vm486_vm6, %v484_v11, 0.0 }
  0xee   : > { %513 = vrot.lane.b32.xlu0 %v484_v11, %s770_s5 }
 0x10b   : > { %488 = vadd.xlane.f32.xlu1 %v487_v49 }
 0x10d   : > { %491 = vadd.xlane.f32.xlu0 %v490_v27 }
 0x11c   : > { %530 = vrot.lane.b32.xlu1 %v485_v3, %s771_s6 }
 0x123   : > { %528 = vrot.lane.b32.xlu0 %v484_v11, %s771_s6 }
 0x127   : > { %543 = vrot.lane.b32.xlu0 %v484_v11, %s772_s7 }
 0x12b   : > { %545 = vrot.lane.b32.xlu0 %v485_v3, %s772_s7 }
 0x12f   : > { %558 = vrot.lane.b32.xlu0 %v484_v11, %s773_s8 }
 0x133   : > { %560 = vrot.lane.b32.xlu0 %v485_v3, %s773_s8 }
 0x137   : > { %573 = vrot.lane.b32.xlu0 %v484_v11, %s774_s9 }
 0x13b   : > { %575 = vrot.lane.b32.xlu0 %v485_v3, %s774_s9 }
 0x13f   : > { %588 = vrot.lane.b32.xlu0 %v484_v11, %s775_s10 }
 0x143   : > { %590 = vrot.lane.b32.xlu0 %v485_v3, %s775_s10 }
 0x155   : > { %v501_v13 = vpop.permute.xlu1 %500 }
 0x156   : > { %v507_v21 = vsel %vm486_vm6, %v501_v13, 0.0 }
 0x159   : > { %v516_v15 = vpop.permute.xlu1 %515 }
 0x15a   : > { %v522_v24 = vsel %vm486_vm6, %v516_v15, 0.0 }
 0x15c   : > { %v499_v14 = vpop.permute.xlu0 %498 }
 0x15d   : > { %v504_v16 = vsel %vm486_vm6, %v499_v14, 0.0 }
 0x15e   : > { %505 = vadd.xlane.f32.xlu1 %v504_v16 }
 0x160   : > { %v514_v19 = vpop.permute.xlu0 %513 }
 0x161   : > { %v519_v23 = vsel %vm486_vm6, %v514_v19, 0.0 }
 0x162   : > { %508 = vadd.xlane.f32.xlu0 %v507_v21  ;;  %520 = vadd.xlane.f32.xlu1 %v519_v23 }
 0x166   : > { %523 = vadd.xlane.f32.xlu0 %v522_v24 }
 0x198   : > { %v489_v25 = vpop.xlane.xlu1 %488 }
 0x199   : > { %v494_v58 = vsel %vm493_vm7, %v489_v25, 0.0 }
 0x19a   : > { %v492_v26 = vpop.xlane.xlu0 %491 }
 0x19b   : > { %v495_v61 = vsel %vm493_vm7, %v492_v26, 0.0 }
 0x19c   : > { %v531_v20 = vpop.permute.xlu1 %530 }
 0x19d   : > { %v537_v28 = vsel %vm486_vm6, %v531_v20, 0.0 }
 0x19e   : > { %v529_v29 = vpop.permute.xlu0 %528  ;;  %538 = vadd.xlane.f32.xlu0 %v537_v28 }
 0x19f   : > { %v534_v31 = vsel %vm486_vm6, %v529_v29, 0.0 }
 0x1a0   : > { %535 = vadd.xlane.f32.xlu1 %v534_v31 }
 0x1a2   : > { %v544_v34 = vpop.permute.xlu0 %543 }
 0x1a3   : > { %v549_v32 = vsel %vm486_vm6, %v544_v34, 0.0 }
 0x1a4   : > { %550 = vadd.xlane.f32.xlu1 %v549_v32 }
 0x1a6   : > { %v546_v35 = vpop.permute.xlu0 %545 }
 0x1a7   : > { %v552_v30 = vsel %vm486_vm6, %v546_v35, 0.0 }
 0x1a8   : > { %553 = vadd.xlane.f32.xlu1 %v552_v30 }
 0x1aa   : > { %v559_v36 = vpop.permute.xlu0 %558 }
 0x1ab   : > { %v564_v37 = vsel %vm486_vm6, %v559_v36, 0.0 }
 0x1ac   : > { %565 = vadd.xlane.f32.xlu1 %v564_v37 }
 0x1ae   : > { %v561_v38 = vpop.permute.xlu0 %560 }
 0x1af   : > { %v567_v40 = vsel %vm486_vm6, %v561_v38, 0.0 }
 0x1b0   : > { %568 = vadd.xlane.f32.xlu1 %v567_v40 }
 0x1b2   : > { %v574_v42 = vpop.permute.xlu0 %573 }
 0x1b3   : > { %v579_v47 = vsel %vm486_vm6, %v574_v42, 0.0 }
 0x1b4   : > { %580 = vadd.xlane.f32.xlu1 %v579_v47 }
 0x1b6   : > { %v576_v41 = vpop.permute.xlu0 %575 }
 0x1b7   : > { %v582_v48 = vsel %vm486_vm6, %v576_v41, 0.0 }
 0x1b8   : > { %583 = vadd.xlane.f32.xlu1 %v582_v48 }
 0x1ba   : > { %v589_v50 = vpop.permute.xlu0 %588 }
 0x1bb   : > { %v594_v51 = vsel %vm486_vm6, %v589_v50, 0.0 }
 0x1bc   : > { %595 = vadd.xlane.f32.xlu1 %v594_v51 }
 0x1be   : > { %v591_v12 = vpop.permute.xlu0 %590 }
 0x1bf   : > { %v597_v53 = vsel %vm486_vm6, %v591_v12, 0.0 }
 0x1c0   : > { %598 = vadd.xlane.f32.xlu1 %v597_v53 }
 0x1eb   : > { %v506_v45 = vpop.xlane.xlu1 %505 }
 0x1ec   : > { %v511_v60 = vsel %vm510_vm8, %v506_v45, %v494_v58 }
 0x1ef   : > { %v521_v46 = vpop.xlane.xlu1 %520  ;;  %v509_v18 = vpop.xlane.xlu0 %508 }
 0x1f0   : > { %v526_v33 = vsel %vm525_vm9, %v521_v46, %v511_v60  ;;  %v512_v0 = vsel %vm510_vm8, %v509_v18, %v495_v61 }
 0x1f3   : > { %v524_v43 = vpop.xlane.xlu0 %523 }
 0x1f4   : > { %v527_v2 = vsel %vm525_vm9, %v524_v43, %v512_v0 }
 0x22b   : > { %v539_v62 = vpop.xlane.xlu0 %538 }
 0x22c   : > { %v542_v4 = vsel %vm540_vm11, %v539_v62, %v527_v2 }
 0x22d   : > { %v536_v54 = vpop.xlane.xlu1 %535 }
 0x22e   : > { %v541_v39 = vsel %vm540_vm11, %v536_v54, %v526_v33 }
 0x231   : > { %v551_v17 = vpop.xlane.xlu1 %550 }
 0x232   : > { %v556_v63 = vsel %vm555_vm10, %v551_v17, %v541_v39 }
 0x235   : > { %v554_v55 = vpop.xlane.xlu1 %553 }
 0x236   : > { %v557_v6 = vsel %vm555_vm10, %v554_v55, %v542_v4 }
 0x239   : > { %v566_v56 = vpop.xlane.xlu1 %565 }
 0x23a   : > { %v571_v1 = vsel %vm570_vm12, %v566_v56, %v556_v63 }
 0x23d   : > { %v569_v57 = vpop.xlane.xlu1 %568 }
 0x23e   : > { %v572_v7 = vsel %vm570_vm12, %v569_v57, %v557_v6 }
 0x241   : > { %v581_v22 = vpop.xlane.xlu1 %580 }
 0x242   : > { %v586_v52 = vsel %vm585_vm13, %v581_v22, %v571_v1 }
 0x245   : > { %v584_v59 = vpop.xlane.xlu1 %583 }
 0x246   : > { %v587_v8 = vsel %vm585_vm13, %v584_v59, %v572_v7 }
 0x249   : > { %v596_v3 = vpop.xlane.xlu1 %595 }
 0x24a   : > { %v601_v5 = vsel %vm600_vm14, %v596_v3, %v586_v52 }
 0x24b   : > { %604 = vst.msk [vmem:[%s243_s13] sm:$0xff] %vm603_vm15, %v601_v5 }
 0x24d   : > { %v599_v9 = vpop.xlane.xlu1 %598 }
 0x24e   : > { %v602_v10 = vsel %vm600_vm14, %v599_v9, %v587_v8 }
 0x24f   : > { %605 = vst.msk [vmem:[%s243_s13 + $0x8] sm:$0xff] %vm603_vm15, %v602_v10 }
 0x250 PF: > { %s14_s15 = sadd.s32 1, %s759_s15  }
 0x251   : > { %p11_p4 = scmp.ge.s32.totalorder %s14_s15, 4  }
 0x253   :  { %13 = sbr.rel (!%p11_p4) target bundleno = 1 (0x1), region = 72 }

</bundles_post_ra>
